<compile_context>
chip_gen: v7x
topology: tpu7x:2x2x1
jax: 0.10.0
libtpu: 0.0.40
codegen_flags: <defaults>
</compile_context>

<pallas_src>
import jax
import jax.numpy as jnp
import numpy as np
from jax.experimental import pallas as pl
from jax.experimental.pallas import tpu as pltpu


def _cross_attn_pool_kernel(x_ref, mask_ref, w_x_ref, out_ref):
    # x_ref   : (Bt, N, D)  clip features, hidden dim D on lanes
    # mask_ref: (Mt, N)     {0,1} anchor-membership mask (bf16; 1 inside span)
    # w_x_ref : (1, D)      clip half of the conv1d 1x1 weight (f32)
    # out_ref : (Bt, Mt, D) pooled proposal features
    x = x_ref[...].astype(jnp.float32)             # compute in f32 (exact vs 1e-5 ref)
    w_x = w_x_ref[...]                             # (1, D)
    mask01 = mask_ref[...].astype(jnp.float32)     # (Mt, N)

    # sim[b, n] = <w_x, x[b, n, :]> on VPU + XLU.  An MXU (1, D)x(D, N) matvec
    # would run at ~1/128 row utilization, so keep it off the MXU; VPU/XLU have
    # slack under the matmul/DMA-dominated loop.
    sim = jnp.sum(x * w_x, axis=-1)                                 # (Bt, N)

    # Shared-exp softmax: one exp per (b, n).  The per-sample shift is
    # softmax-invariant, so the per-anchor normalized scores match the
    # reference masked softmax (masked-out entries underflow to exactly 0 in
    # the reference's exp(sim - 1e10 - max) anyway).
    # TODO(synk): if sim's in-sample dynamic range can exceed ~80 (f32 exp
    # underflow), fall back to a per-anchor max of the masked-in entries.
    row_max = jnp.max(sim, axis=-1, keepdims=True)                  # (Bt, 1)  XLU
    e = jnp.exp(sim - row_max)                                      # (Bt, N)  EUP

    # Attention pooling through the {0,1} mask: contract over clips (K = N) on
    # the MXU.  x is already (N, D) per sample so the RHS is in natural MXU
    # orientation and the (Mt, D) result is lane-dense for real hidden sizes.
    xe = x * e[:, :, None]                                          # (Bt, N, D) VPU
    bt, _, _ = x.shape
    mt, n = mask01.shape
    mask_b = jnp.broadcast_to(mask01[None], (bt, mt, n))            # (Bt, Mt, N)
    pooled = jnp.einsum('bmn,bnd->bmd', mask_b, xe,
                        preferred_element_type=jnp.float32)         # (Bt, Mt, D)
    # Denominator is a plain 2D matmul (no (Bt, Mt, N) exp / divide hot path).
    denom = jnp.einsum('bn,mn->bm', e, mask01,
                       preferred_element_type=jnp.float32)          # (Bt, Mt)

    # Fold normalization in after the matmul: Bt*Mt reciprocals + Bt*Mt*D muls
    # instead of Bt*Mt*N divides.  approx=False keeps the f32 output exact to
    # 1e-5; switch to approx=True (EUP, ~1e-4 rel. err.) once output is bf16.
    inv = pl.reciprocal(denom, approx=False)[:, :, None]            # (Bt, Mt, 1)
    out_ref[...] = (pooled * inv).astype(out_ref.dtype)


def _vmem_budget_bytes():
    """Generation-aware VMEM budget with headroom."""
    try:
        cap = pltpu.get_tpu_info().vmem_capacity_bytes
    except Exception:
        cap = 64 * 1024 * 1024          # conservative (v7x-sized) fallback
    # ~<=100 MiB on v5e/v6e (128 MiB physical), ~54 MiB on v7x (64 MiB).
    return min(int(0.85 * cap), 100 * 1024 * 1024)


def _pick_batch_tile(B, M, N, D, in_bytes, out_bytes, mask_bytes, budget):
    """Largest batch tile that fits the VMEM budget while keeping enough grid
    steps for DMA/compute overlap and (on v7x) megacore sharding."""
    target_steps = min(4, B)
    best = 1
    for bt in range(1, B + 1):
        if B % bt:
            continue
        need = (2 * bt * N * D * in_bytes          # x tile, double-buffered
                + 2 * bt * M * D * out_bytes       # out tile, double-buffered
                + M * N * mask_bytes               # resident {0,1} mask
                + 2 * bt * N * D * 4               # f32 x / x*e intermediates
                + bt * M * D * 4                   # f32 pooled intermediate
                + bt * M * N * 4)                  # broadcast mask intermediate
        if need <= budget and (B // bt) >= target_steps:
            best = bt
    return best


def cross_attention_pooling(x, queries, qmask, prop_mask,
                            w_lang, b_lang, w_q, w_x, b_conv,
                            *, batch_tile=None, anchor_tile=None,
                            out_dtype=None):
    """Forward pass of Learnable_Cross_Attention_Pooling.

    x         : (B, D, N)  clip features (PyTorch NCW layout)
    prop_mask : (M, N)     additive anchor mask (1e10 outside span, 0 inside)
    w_x       : (1, D)     clip half of the conv1d 1x1 weight
    The remaining arguments (queries, qmask, w_lang, b_lang, w_q, b_conv) do
    not influence the forward output (softmax shift-invariance, see header);
    they are accepted only for signature parity with the PyTorch module.
    """
    del queries, qmask, w_lang, b_lang, w_q, b_conv   # dead in the forward pass
    B, D, N = x.shape
    M = prop_mask.shape[0]
    out_dtype = x.dtype if out_dtype is None else out_dtype

    # Lane-friendly layout: D on the minor (lane) axis for the input tiles,
    # the pooling-matmul RHS and the (M, D) output store.
    x_nd = jnp.transpose(x, (0, 2, 1))                # (B, N, D)

    # {0,1} anchor-membership mask, bf16 (exact for 0/1, half the resident
    # footprint of the f32 additive mask; it is reused by every grid step).
    mask01 = (prop_mask < 0.5).astype(jnp.bfloat16)   # (M, N)
    w_x32 = w_x.astype(jnp.float32)

    budget = _vmem_budget_bytes()
    if batch_tile is None:
        bt = _pick_batch_tile(B, M, N, D,
                              x_nd.dtype.itemsize, jnp.dtype(out_dtype).itemsize,
                              mask01.dtype.itemsize, budget)
    else:
        bt = batch_tile
    assert B % bt == 0, "batch_tile must divide B"

    mt = M if anchor_tile is None else anchor_tile
    assert M % mt == 0 and (mt == M or mt % 8 == 0), \
        "anchor_tile must divide M and be a multiple of 8 (or equal M)"

    return pl.pallas_call(
        _cross_attn_pool_kernel,
        out_shape=jax.ShapeDtypeStruct((B, M, D), out_dtype),
        grid=(B // bt, M // mt),
        in_specs=[
            pl.BlockSpec((bt, N, D), lambda i, j: (i, 0, 0)),   # x; resident over j
            pl.BlockSpec((mt, N), lambda i, j: (j, 0)),         # {0,1} mask tile
            pl.BlockSpec((1, D), lambda i, j: (0, 0)),          # w_x (resident)
        ],
        out_specs=pl.BlockSpec((bt, mt, D), lambda i, j: (i, j, 0)),
        compiler_params=pltpu.CompilerParams(
            # Grid steps are fully independent -> shard across the two
            # TensorCores on v7x; no effect / no cost on single-TC v5e / v6e.
            dimension_semantics=("parallel", "parallel"),
            vmem_limit_bytes=budget),
    )(x_nd, mask01, w_x32)


def reference(x, queries, qmask, prop_mask, w_lang, b_lang, w_q, w_x, b_conv):
    # Pure-JAX transcription of the FULL PyTorch forward (including the
    # sentence-pooling branch that the kernel folds away).
    sim_l = jnp.einsum('d,bld->bl', w_lang[0], queries) + b_lang[0, 0]
    sim_l = sim_l[:, None, :] - qmask
    scores_l = jax.nn.softmax(sim_l, axis=-1)
    sent = jnp.einsum('bol,bld->bod', scores_l, queries)[:, 0, :]      # (B, D)
    base = jnp.einsum('d,bd->b', w_q[0], sent)
    sim = jnp.einsum('d,bdn->bn', w_x[0], x) + base[:, None] + b_conv[0, 0]
    sim = sim[:, None, :] - prop_mask[None]
    scores = jax.nn.softmax(sim, axis=-1)
    return jnp.einsum('bmn,bdn->bmd', scores, x)


if __name__ == "__main__":
    BIG = 1e10
    B, D, N, L, M = 2, 32, 16, 8, 4   # batch, hidden, num_clips, max_words, num_anchors

    key = jax.random.PRNGKey(0)
    kx, kq, kwl, kbl, kwc, kbc = jax.random.split(key, 6)

    # Inputs
    x = jax.random.normal(kx, (B, D, N), dtype=jnp.float32)
    queries = jax.random.normal(kq, (B, L, D), dtype=jnp.float32)
    wordlens = [5, 8]

    # Query padding mask (1e10 on padded positions), as in _create_query_mask.
    qmask_np = np.zeros((B, 1, L), dtype=np.float32)
    for i, wl in enumerate(wordlens):
        qmask_np[i, :, wl:] = BIG
    qmask = jnp.asarray(qmask_np)

    # Proposal mask from anchors: [anchor_id, start, end] (inclusive), as in __init__.
    anchors = np.array([[0, 0, 3],
                        [1, 4, 7],
                        [2, 8, 15],
                        [3, 2, 9]], dtype=np.int32)
    prop_mask_np = np.full((M, N), BIG, dtype=np.float32)
    for i, a in enumerate(anchors[:M]):
        prop_mask_np[i, a[1]:a[2] + 1] = 0.0
    prop_mask = jnp.asarray(prop_mask_np)

    # Deterministic parameter init (conv1d: 2D->1, k=1; conv1d_lang: D->1, k=1).
    w_lang = jax.random.normal(kwl, (1, D), dtype=jnp.float32) * 0.1
    b_lang = jax.random.normal(kbl, (1, 1), dtype=jnp.float32) * 0.1
    conv_w = jax.random.normal(kwc, (2 * D,), dtype=jnp.float32) * 0.1
    w_q = conv_w[:D].reshape(1, D)       # acts on the expanded sentence feature
    w_x = conv_w[D:].reshape(1, D)       # acts on the clip features
    b_conv = jax.random.normal(kbc, (1, 1), dtype=jnp.float32) * 0.1

    out = cross_attention_pooling(x, queries, qmask, prop_mask,
                                  w_lang, b_lang, w_q, w_x, b_conv)
    out = jax.block_until_ready(out)

    ref = reference(x, queries, qmask, prop_mask, w_lang, b_lang, w_q, w_x, b_conv)
    ref = jax.block_until_ready(ref)

    assert out.shape == (B, M, D)
    np.testing.assert_allclose(np.asarray(out), np.asarray(ref), rtol=1e-5, atol=1e-5)
    print("KERNEL_OK")
</pallas_src>

<mosaic_0001>
module attributes {stable_mosaic.version = 11 : i64} {
  func.func @_cross_attn_pool_kernel(%arg0: i32, %arg1: i32, %arg2: memref<1x16x32xf32, #tpu.memory_space<vmem>>, %arg3: memref<4x16xbf16, #tpu.memory_space<vmem>>, %arg4: memref<1x32xf32, #tpu.memory_space<vmem>>, %arg5: memref<1x4x32xf32, #tpu.memory_space<vmem>>) attributes {dimension_semantics = [#tpu.dimension_semantics<parallel>, #tpu.dimension_semantics<parallel>], iteration_bounds = array<i64: 2, 1>, scalar_prefetch = 0 : i64, scratch_operands = 0 : i64, tpu.core_type = #tpu.core_type<tc>, window_params = [{transform_indices = @transform_0, window_bounds = array<i64: 1, 16, 32>}, {transform_indices = @transform_1, window_bounds = array<i64: 4, 16>}, {pipeline_mode = #tpu.pipeline_mode<synchronous>, transform_indices = @transform_2, window_bounds = array<i64: 1, 32>}, {transform_indices = @transform_3, window_bounds = array<i64: 1, 4, 32>}]} {
    %c0 = arith.constant 0 : index
    %c0_0 = arith.constant 0 : index
    %c0_1 = arith.constant 0 : index
    %0 = vector.load %arg2[%c0, %c0_0, %c0_1] : memref<1x16x32xf32, #tpu.memory_space<vmem>>, vector<1x16x32xf32>
    %c0_2 = arith.constant 0 : index
    %c0_3 = arith.constant 0 : index
    %1 = vector.load %arg4[%c0_2, %c0_3] : memref<1x32xf32, #tpu.memory_space<vmem>>, vector<1x32xf32>
    %c0_4 = arith.constant 0 : index
    %c0_5 = arith.constant 0 : index
    %2 = vector.load %arg3[%c0_4, %c0_5] : memref<4x16xbf16, #tpu.memory_space<vmem>>, vector<4x16xbf16>
    %3 = arith.extf %2 : vector<4x16xbf16> to vector<4x16xf32>
    %4 = vector.shape_cast %1 : vector<1x32xf32> to vector<1x1x32xf32>
    %5 = vector.broadcast %4 : vector<1x1x32xf32> to vector<1x16x32xf32>
    %6 = arith.mulf %0, %5 : vector<1x16x32xf32>
    %cst = arith.constant dense<0.000000e+00> : vector<1x16xf32>
    %7 = vector.multi_reduction <add>, %6, %cst [2] : vector<1x16x32xf32> to vector<1x16xf32>
    %cst_6 = arith.constant dense<0xFF800000> : vector<1xf32>
    %8 = vector.multi_reduction <maximumf>, %7, %cst_6 [1] : vector<1x16xf32> to vector<1xf32>
    %9 = vector.shape_cast %8 : vector<1xf32> to vector<1x1xf32>
    %10 = vector.broadcast %9 : vector<1x1xf32> to vector<1x16xf32>
    %11 = arith.subf %7, %10 : vector<1x16xf32>
    %12 = math.exp %11 : vector<1x16xf32>
    %13 = vector.shape_cast %12 : vector<1x16xf32> to vector<1x16x1xf32>
    %14 = vector.broadcast %13 : vector<1x16x1xf32> to vector<1x16x32xf32>
    %15 = arith.mulf %0, %14 : vector<1x16x32xf32>
    %16 = vector.shape_cast %3 : vector<4x16xf32> to vector<1x4x16xf32>
    "tpu.trace_start"() <{level = 10 : i32, message = "bmn,bnd->bmd"}> : () -> ()
    %cst_7 = arith.constant dense<0.000000e+00> : vector<1x4x32xf32>
    %17 = tpu.matmul %16, %15, %cst_7 {dimension_numbers = #tpu.dot_dimension_numbers<[2], [1], [1], [2], [0, 0, 0, 1, 1, 2], [0], [0]>} : vector<1x4x16xf32>, vector<1x16x32xf32>, vector<1x4x32xf32> -> vector<1x4x32xf32>
    "tpu.trace_stop"() : () -> ()
    "tpu.trace_start"() <{level = 10 : i32, message = "bn,mn->bm"}> : () -> ()
    %cst_8 = arith.constant dense<0.000000e+00> : vector<1x4xf32>
    %18 = tpu.matmul %12, %3, %cst_8 {dimension_numbers = #tpu.dot_dimension_numbers<[1], [1], [0], [0], [0, 0, 1, 0], [], []>} : vector<1x16xf32>, vector<4x16xf32>, vector<1x4xf32> -> vector<1x4xf32>
    "tpu.trace_stop"() : () -> ()
    %19 = tpu.reciprocal %18 : vector<1x4xf32> -> vector<1x4xf32>
    %20 = vector.shape_cast %19 : vector<1x4xf32> to vector<1x4x1xf32>
    %21 = vector.broadcast %20 : vector<1x4x1xf32> to vector<1x4x32xf32>
    %22 = arith.mulf %17, %21 : vector<1x4x32xf32>
    %c0_9 = arith.constant 0 : index
    %c0_10 = arith.constant 0 : index
    %c0_11 = arith.constant 0 : index
    %23 = vector.load %arg5[%c0_9, %c0_10, %c0_11] : memref<1x4x32xf32, #tpu.memory_space<vmem>>, vector<1x4x32xf32>
    tpu.vector_store %arg5[%c0_9, %c0_10, %c0_11], %22 {strides = array<i32>} : memref<1x4x32xf32, #tpu.memory_space<vmem>>, vector<1x4x32xf32>,
    return
  }
  func.func @transform_0(%arg0: i32, %arg1: i32) -> (i32, i32, i32) {
    %c0_i32 = arith.constant 0 : i32
    %c0_i32_0 = arith.constant 0 : i32
    %c0_i32_1 = arith.constant 0 : i32
    return %arg0, %c0_i32, %c0_i32_0 : i32, i32, i32
  }
  func.func @transform_1(%arg0: i32, %arg1: i32) -> (i32, i32) {
    %c0_i32 = arith.constant 0 : i32
    %c0_i32_0 = arith.constant 0 : i32
    return %arg1, %c0_i32 : i32, i32
  }
  func.func @transform_2(%arg0: i32, %arg1: i32) -> (i32, i32) {
    %c0_i32 = arith.constant 0 : i32
    %c0_i32_0 = arith.constant 0 : i32
    %c0_i32_1 = arith.constant 0 : i32
    return %c0_i32, %c0_i32_0 : i32, i32
  }
  func.func @transform_3(%arg0: i32, %arg1: i32) -> (i32, i32, i32) {
    %c0_i32 = arith.constant 0 : i32
    %c0_i32_0 = arith.constant 0 : i32
    return %arg0, %arg1, %c0_i32 : i32, i32, i32
  }
}

</mosaic_0001>

<bundles_post_ra>
// kernel: tpu_custom_call.1
= control target key start
LH: loop header
LB: loop body
LE: loop exit
PB: predicated region body
PF: predicated region fallthrough
CT: control target
= control target key end

     0   :  { %8 = vsyncpa [#allocation3], 0  ;;  %s973_s0 = inlined_call_operand.hbm [shape: f32[2,16,32], index: 0, kind: input, shape index: {}]   ;;  %s974_s1 = inlined_call_operand.vmem [shape: bf16[4,16], index: 1, kind: input, shape index: {}]   ;;  %s975_s2 = inlined_call_operand.vmem [shape: f32[1,32], index: 2, kind: input, shape index: {}]   ;;  %s976_s3 = inlined_call_operand.hbm [shape: f32[2,4,32], index: 3, kind: output, shape index: {}]  }
   0x1   :  { %10 = vsyncpa [#allocation3 + $0x1], 0 }
   0x2   :  { %11 = vsyncpa [#allocation4], 0 }
   0x3   :  { %13 = vsyncpa [#allocation4 + $0x1], 0  ;;  %s790_s12 = smov 0   ;;  %s792_s13 = smov 0  }
   0x4   :  { %s794_s14 = smov 0   ;;  %s796_s15 = smov 0  }
   0x5   :  { %s798_s16 = smov 0   ;;  %s800_s17 = smov 0  }
   0x6 LB: > { %s536_s18 = sadd.s32 4294967295, %s761_s17   ;;  %s537_s19 = sadd.s32 4294967294, %s761_s17   ;;  %s761_s17 = sphi %s800_s17, %s19_s17   ;;  %s757_s16 = sphi %s798_s16, %s991_s16   ;;  %s753_s15 = sphi %s796_s15, %s990_s15   ;;  %s749_s14 = sphi %s794_s14, %s989_s14   ;;  %s745_s13 = sphi %s792_s13, %s988_s13   ;;  %s741_s12 = sphi %s790_s12, %s987_s12  }
   0x7   : > { %s31_s20 = sadd.s32 1, %s757_s16  ;;  %s38_s21 = sadd.s32 1, %s749_s14 }
   0x8   : > { %p33_p0 = scmp.ge.s32.totalorder %s31_s20, 2  ;;  %p45_p1 = scmp.ne.s32.totalorder %s749_s14, %s745_s13 }
   0x9   : > { %p46_p2 = scmp.eq.s32.totalorder %s761_s17, 0  ;;  %p51_p3 = scmp.ne.s32.totalorder %s745_s13, %s741_s12 }
   0xa   : > { %s993_s20 = smov (%p33_p0, %s31_s20), 0  ;;  %p52_p5 = scmp.eq.s32.totalorder %s536_s18, 0 }
   0xb   : > { %p831_p4 = por %p46_p2, %p45_p1  ;;  %s35_s23 = ssub.s32 %s757_s16, %s993_s20 }
   0xc   : > { %p124_p6 = scmp.eq.s32.totalorder %s536_s18, 1  ;;  %p36_p7 = scmp.eq.s32.totalorder %s35_s23, 0 }
   0xd   : > { %p837_p8 = por %p52_p5, %p51_p3  ;;  %p130_p10 = scmp.eq.s32.totalorder %s537_s19, 1 }
   0xe   : > { %p841_p9 = por %p124_p6, %p45_p1  ;;  %p588_p13 = scmp.lt.s32.totalorder %s761_s17, 2 }
   0xf   : > { %s846_s26 = scalar_select %p36_p7, %s749_s14, %s38_s21  }
  0x10   : > { %s980_s25 = scalar_select %p841_p9, 1, 0 }
  0x11   : > { %p848_p11 = por %p130_p10, %p51_p3  ;;  %s160_s28 = sand.u32 1, %s749_s14  }
  0x12   : > { %s541_s29 = sshll.u32 %s160_s28, 4  ;;  %s555_s30 = sshll.u32 %s757_s16, 8 }
  0x13   : > { %s981_s27 = scalar_select %p848_p11, 1, 0 }
  0x14   : > { %s859_s6 = scalar_lea.hbm %s973_s0, %s555_s30  ;;  %s164_s7 = scalar_lea.vmem [#allocation2], %s541_s29 }
  0x15   : > { %s171_s8 = sshll.u32 %s164_s7, 4  ;;  %p865_p0 = pnand %p588_p13, %p831_p4  ;;  %s861_s8 = int_to_ptr.vmem [resolvable:$true] %s171_s8 }
  0x16   : > { %s870_s10 = scalar_lea.sflag [#allocation3], %s160_s28  ;;  %s649_s11 = scalar_lea.hbm %s859_s6, 256 }
  0x17   : > { %p650_p2 = scmp.ne.s32.totalorder %s859_s6, %s649_s11  ;;  %p651_p3 = pneg %p865_p0 }
  0x18   : > { %s654_s21 = scalar_lea.hbm %s973_s0, 512  ;;  %p655_p4 = scmp.lt.u32.totalorder %s859_s6, %s973_s0 }
  0x19   : > { %p652_p5 = pnand %p651_p3, %p650_p2  ;;  %p656_p7 = scmp.lt.u32.totalorder %s654_s21, %s649_s11 }
  0x1a   : > { %p658_p13 = scmp.lt.u32.totalorder %s649_s11, %s859_s6 }
  0x1b   : > { %p653_p6 = pneg %p652_p5  ;;  %p657_p10 = por %p656_p7, %p655_p4 }
  0x1d   : > { %p659_p12 = por %p658_p13, %p657_p10 }
  0x1f   : > { %p660_p1 = pnand %p659_p12, %p653_p6 }
  0x21   : > { %663 = shalt.err (!%p660_p1)
}
  0x22   : > { %s664_s28 = scalar_lea.vmem %s861_s8, 256  ;;  %s763_s29 = smov [#allocation2]  }
  0x23   : > { %p665_p2 = scmp.ne.s32.totalorder %s861_s8, %s664_s28  ;;  %s669_s30 = sshll.u32 %s763_s29, 4  ;;  %s670_s30 = int_to_ptr.vmem [resolvable:$false] %s669_s30 }
  0x24   : > { %s671_s4 = scalar_lea.vmem %s670_s30, 512  ;;  %p672_p9 = scmp.lt.s32.totalorder %s861_s8, %s670_s30 }
  0x25   : > { %p667_p5 = pnand %p665_p2, %p651_p3  ;;  %p673_p4 = scmp.lt.s32.totalorder %s671_s4, %s664_s28 }
  0x27   : > { %p668_p11 = pneg %p667_p5  ;;  %p674_p7 = por %p673_p4, %p672_p9 }
  0x29   : > { %p675_p10 = pnand %p674_p7, %p668_p11 }
  0x2b   : > { %678 = shalt.err (!%p675_p10)
}
  0x2c   : > { %s764_s5 = smov 128   ;;  %s765_s7 = smov 8  }
  0x2d   : > { %583 = dma.hbm_to_vmem [thread:$0]  (!%p865_p0), %s859_s6, 256, %s861_s8, %s870_s10, %s764_s5, %s764_s5, %s765_s7  }
  0x2e   : > { %p179_p12 = scmp.lt.s32.totalorder %s761_s17, 3  ;;  %p983_p1 = scmp.ge.s32.totalorder %s761_s17, 1 }
  0x30   : > { %p180_p3 = pnand %p983_p1, %p179_p12 }
  0x31   : > { %s902_s11 = sand.u32 (!%p180_p3), 1, %s745_s13  }
  0x32   : > { %183 = sbr.rel (%p180_p3) target bundleno = 598 (0x256), region = 32  ;;  %s545_s18 = sshll.u32 (!%p180_p3), %s902_s11, 4 }
  0x33   : > { %s186_s19 = scalar_lea.sflag (!%p180_p3), [#allocation3], %s902_s11  ;;  %s189_s21 = scalar_lea.vmem (!%p180_p3), [#allocation2], %s545_s18 }
  0x39   : > { %732 = dma.done.wait (%p837_p8), %s186_s19, 256  }
  0x3a   : > { %734 = vsyncadd (%p837_p8), %s186_s19, 4294967040  ;;  %v220_v0 = vld [vmem:[%s189_s21] sm:$0xff]  ;;  %vm233_vm0 = vcmask 261120   ;;  %v221_v2 = vld [vmem:[%s189_s21 + $0x8] sm:$0xff]  ;;  %vm255_vm1 = vcmask 130048   ;;  %v766_v8 = vmov 0.0   ;;  %v331_v22 = vlaneseq }
  0x3b   : > { %v547_v1 = vld [vmem:[%s975_s2] ss:$0 sm:$0xff]  ;;  %568 = vmatprep.subr.mxu1 %v766_v8  ;;  %vm767_vm2 = vmmov 0   ;;  %v768_v10 = vmov 0.0|0.0   ;;  %vm342_vm3 = vcmask 130112   ;;  %s546_s24 = sshll.u32 %s902_s11, 2 }
  0x3c   : > { %v231_v3 = vmul.f32 %v547_v1, %v220_v0  ;;  %v232_v4 = vmul.f32 %v547_v1, %v221_v2  ;;  %v223_v7 = vld [vmem:[%s974_s1] sm:$0x3]  ;;  %570 = vmatprep.mubr.msk.f32.mxu1 %vm767_vm2, %v766_v8  ;;  %573 = vmatprep.subr.bf16.mxu0 %v768_v10  ;;  %v332_v25 = vand.u32 127, %v331_v22  ;;  %v334_v26 = vshrl.u32 %v331_v22, 7  ;;  %s552_s22 = sshll.u32 %s753_s15, 6  ;;  %s215_s23 = scalar_lea.vmem [#allocation5], %s546_s24 }
  0x3d   : > { %v224_v9 = vunpack.c.l.bf16 %v223_v7  ;;  %565 = vmatprep.mubr.msk.f32.mxu0 %vm767_vm2, %v766_v8  ;;  %s442_s28 = sshll.u32 %s215_s23, 4  ;;  %vm425_vm4 = vcmask 257024   ;;  %s924_s4 = scalar_lea.hbm %s976_s3, %s552_s22  ;;  %s926_s28 = int_to_ptr.vmem [resolvable:$true] %s442_s28 }
  0x3e   : > { %v234_v5 = vsel %vm233_vm0, %v231_v3, 0.0  ;;  %v237_v6 = vsel %vm233_vm0, %v232_v4, 0.0  ;;  %v337_v27 = vadd.s32 4294967288, %v332_v25  ;;  %v335_v28 = vsub.s32 %v332_v25, %v334_v26  ;;  %s428_s5 = scalar_lea.sflag [#allocation4], %s902_s11  ;;  %s679_s7 = scalar_lea.vmem %s926_s28, 64 }
  0x3f   : > { %235 = vadd.xlane.f32.xlu0 %v234_v5  ;;  %569 = vmatpush3.xpose.msk.msra.mxu1 %vm255_vm1, %v224_v9  ;;  %v419_v42 = vsub.s32 0, %v334_v26  ;;  %p680_p8 = scmp.ne.s32.totalorder %s926_s28, %s679_s7  ;;  %p984_p9 = scmp.ne.s32.totalorder %s980_s25, 0 }
  0x40   : > { %v340_v29 = vsub.s32 %v337_v27, %v334_v26  ;;  %s769_s15 = smov [#allocation5]  }
  0x41   : > { %p681_p11 = pnand %p680_p8, %p984_p9  ;;  %s683_s18 = sshll.u32 %s769_s15, 4  ;;  %s684_s18 = int_to_ptr.vmem [resolvable:$false] %s683_s18 }
  0x42   : > { %s685_s19 = scalar_lea.vmem %s684_s18, 128  ;;  %p686_p6 = scmp.lt.s32.totalorder %s926_s28, %s684_s18 }
  0x43   : > { %238 = vadd.xlane.f32.xlu0 %v237_v6  ;;  %p682_p0 = pneg %p681_p11  ;;  %p687_p13 = scmp.lt.s32.totalorder %s685_s19, %s679_s7 }
  0x45   : > { %p688_p2 = por %p687_p13, %p686_p6 }
  0x47   : > { %p689_p5 = pnand %p688_p2, %p682_p0 }
  0xcc   : > { %v236_v11 = vpop.xlane.xlu0 %235 }
  0xd0   : > { %v239_v12 = vpop.xlane.xlu0 %238 }
  0xd1   : > { %v240_v13 = vmax.f32 %v236_v11, %v239_v12 }
  0xd3   : > { %v241_v14 = vrot.slane %v240_v13, 4 }
  0xd5   : > { %v242_v15 = vmax.f32 %v240_v13, %v241_v14 }
  0xd7   : > { %v243_v16 = vrot.slane %v242_v15, 2 }
  0xd9   : > { %v244_v17 = vmax.f32 %v242_v15, %v243_v16 }
  0xdb   : > { %v245_v18 = vrot.slane %v244_v17, 1 }
  0xdd   : > { %v246_v19 = vmax.f32 %v244_v17, %v245_v18 }
  0xdf   : > { %v247_v20 = vsub.f32 %v236_v11, %v246_v19  ;;  %v248_v21 = vsub.f32 %v239_v12, %v246_v19 }
  0xe1   : > { %v249_v23 = vmul.f32 1.442695, %v247_v20  ;;  %v251_v24 = vmul.f32 1.442695, %v248_v21 }
  0xe3   : > { %643 = vpow2.f32 %v249_v23 }
  0xe4   : > { %645 = vpow2.f32 %v251_v24 }
  0xed   : > { %v644_v30 = vpop.eup %643 }
  0xee   : > { %v646_v31 = vpop.eup %645  ;;  %v336_v32 = vrot.slane %v644_v30, %v335_v28  ;;  %v253_v33 = vmul.f32 %v644_v30, %v220_v0 }
  0xef   : > { %v341_v34 = vrot.slane %v646_v31, %v340_v29  ;;  %v254_v35 = vmul.f32 %v646_v31, %v221_v2 }
  0xf1   : > { %v343_v36 = vsel %vm342_vm3, %v341_v34, %v336_v32  ;;  %v574_v37 = vpack.c.bf16 %v254_v35, %v253_v33 }
  0xf2   : > { %571 = vmatmul.mubr.msk.f32.vlgmr.msra.gmra.mrb[0].mxu1 %vm255_vm1, %v343_v36 }
  0xf3   : > { %575 = vmatpush3.bf16.msra.mxu0 %v574_v37 }
  0xf6   : > { %566 = vmatmul.mubr.msk.f32.vlgmr.msra.gmra.mrb[0].mxu0 %vm255_vm1, %v224_v9 }
 0x1c5   : > { %v412_v38 = vpop.f32.mrb[0].mxu1 }
 0x1c6   : > { %647 = vrcp.f32 %v412_v38  ;;  %v572_v39 = vpop.f32.mrb[1].mxu1 }
 0x1c9   : > { %v325_v40 = vpop.f32.mrb[0].mxu0 }
 0x1ca   : > { %v567_v41 = vpop.f32.mrb[1].mxu0 }
 0x1d0   : > { %v648_v43 = vpop.eup %647 }
 0x1d1   : > { %v420_v44 = vrot.slane %v648_v43, %v419_v42 }
 0x1d3   : > { %422 = vbcast.lane.b32.xlu1 %v420_v44, 256 }
 0x245   : > { %v423_v45 = vpop.permute.xlu1 %422 }
 0x246   : > { %v424_v46 = vmul.f32 %v423_v45, %v325_v40 }
 0x248   : > { %426 = vst.msk [vmem:[%s215_s23] sm:$0xf] %vm425_vm4, %v424_v46 }
 0x249   : > { %692 = shalt.err (!%p689_p5)
}
 0x24a   : > { %s693_s11 = scalar_lea.hbm %s924_s4, 64  ;;  %s697_s8 = scalar_lea.hbm %s976_s3, 128 }
 0x24b   : > { %p694_p4 = scmp.ne.s32.totalorder %s924_s4, %s693_s11  ;;  %p698_p12 = scmp.lt.u32.totalorder %s924_s4, %s976_s3 }
 0x24c   : > { %p699_p1 = scmp.lt.u32.totalorder %s697_s8, %s693_s11  ;;  %p701_p8 = scmp.lt.u32.totalorder %s693_s11, %s924_s4 }
 0x24d   : > { %p695_p7 = pnand %p694_p4, %p984_p9 }
 0x24e   : > { %p700_p3 = por %p699_p1, %p698_p12 }
 0x24f   : > { %p696_p10 = pneg %p695_p7 }
 0x250   : > { %p702_p11 = por %p701_p8, %p700_p3 }
 0x252   : > { %p703_p0 = pnand %p702_p11, %p696_p10 }
 0x254   : > { %706 = shalt.err (!%p703_p0)
}
 0x255   : > { %578 = dma.vmem_to_hbm [thread:$0]  (%p984_p9), %s926_s28, 64, %s924_s4, %s428_s5  }
 0x256 PF: > { %s454_s24 = sand.u32 1, %s741_s12   ;;  %p985_p6 = scmp.ne.s32.totalorder %s981_s27, 0 }
 0x257   : > { %p986_p13 = scmp.ge.s32.totalorder %s761_s17, 2  ;;  %s455_s22 = scalar_lea.sflag [#allocation4], %s454_s24 }
 0x259   : > { %p585_p2 = pnand %p986_p13, %p985_p6 }
 0x25b   : > { %736 = dma.done.wait (!%p585_p2), %s455_s22, 64  }
 0x25c   : > { %738 = vsyncadd (!%p585_p2), %s455_s22, 4294967232  ;;  %s19_s17 = sadd.s32 1, %s761_s17   ;;  %s987_s12 = smov %s745_s13 }
 0x25d   : > { %p16_p5 = scmp.ge.s32.totalorder %s19_s17, 4   ;;  %s988_s13 = smov %s749_s14 }
 0x25e   : > { %s989_s14 = smov %s846_s26  ;;  %s990_s15 = smov %s757_s16 }
 0x25f   : > { %s991_s16 = smov %s993_s20  ;;  %18 = sbr.rel (!%p16_p5) target bundleno = 6 (0x6), region = 80 }
 0x266   :  { %460 = vsyncpa [#allocation3], 1 }
 0x267   :  { %462 = vsyncpa [#allocation3 + $0x1], 1 }
 0x268   :  { %463 = vsyncpa [#allocation4], 1 }
 0x269   :  { %465 = vsyncpa [#allocation4 + $0x1], 1 }

</bundles_post_ra>
